<compile_context>
chip_gen: v7x
topology: tpu7x:2x2x1
jax: 0.10.0
libtpu: 0.0.40
codegen_flags: <defaults>
</compile_context>

<pallas_src>
import functools

import jax
import jax.numpy as jnp
import numpy as np
from jax.experimental import pallas as pl
from jax.experimental.pallas import tpu as pltpu


def toy_model_kernel(x_ref, g_ref, b_ref, o_ref, *, compute_dtype):
    # Cast x in-kernel (free on the VPU; avoids a separate wrapper cast pass
    # over HBM), single fused MXU matmul y = x @ G with G = W @ W.T
    # (block-diagonally packed), f32 accumulate, f32 bias + ReLU epilogue.
    x = x_ref[...].astype(compute_dtype)
    y = jnp.dot(x, g_ref[...], preferred_element_type=jnp.float32)
    y = y + b_ref[...]                                    # (1, Dp) broadcast, f32
    o_ref[...] = jnp.maximum(y, 0.0).astype(o_ref.dtype)


def _round_up(a, m):
    return (a + m - 1) // m * m


def _vmem_capacity_bytes():
    """Physical VMEM of the current part; conservative 64 MiB if unqueryable."""
    try:
        info = pltpu.get_tpu_info()
        cap = getattr(info, "vmem_capacity_bytes", None)
        if cap:
            return int(cap)
    except Exception:  # pragma: no cover - hardware query is best-effort
        pass
    return 64 * 1024 * 1024


def _pick_tb(rows, dp, x_isz, o_isz, vmem_cap):
    """Pick the packed-row batch tile.

    Budget is derived from the real VMEM capacity (bigger tiles amortize the
    ~0.35us/step grid overhead). On ~64 MiB parts (v7x, 2 TensorCores) we want
    >= 4 grid steps when the batch is big enough so each core double-buffers;
    on v5e/v6e (single TC, 128 MiB) small batches get one big tile.
    """
    if rows <= 8:
        return rows
    bytes_per_row = dp * (x_isz + o_isz)
    # x-tile + out-tile budget per grid step (double-buffered by Pallas).
    step_budget = max(1 << 20, min(vmem_cap // 6, 32 << 20))
    cap = max(8, (step_budget // bytes_per_row) // 8 * 8)
    is_v7x_like = vmem_cap <= (64 << 20)
    if is_v7x_like and rows >= 32:
        cap = min(cap, max(8, (rows // 4) // 8 * 8))   # >= 4 tiles -> >= 2 per core
    if cap >= rows:
        return rows                                    # single biggest tile
    return cap


def anthropic_toy_model(x, W, b, *, tb=None, compute_dtype=jnp.bfloat16,
                        out_dtype=None):
    B, D_in = x.shape
    D_in_w, D_hid = W.shape
    assert D_in == D_in_w
    if out_dtype is None:
        out_dtype = x.dtype

    # --- Fuse W @ W.T once outside the hot loop (G is D_in x D_in, tiny). ---
    Wf = W.astype(jnp.float32)
    G = Wf @ Wf.T                                        # (D_in, D_in), f32

    # --- Lane-dense packing: pack `pack` batch rows per 128-lane row. Pad B so
    #     the packed path is always taken (no masked 32-lane stores). ---
    pack = 1
    if D_in < 128 and 128 % D_in == 0:
        pack = 128 // D_in
    B_pad = _round_up(B, pack)
    x_in = x
    if B_pad != B:
        x_in = jnp.pad(x, ((0, B_pad - B), (0, 0)))
    x_p = x_in.reshape(B_pad // pack, pack * D_in)       # (Rp, Dp), row-major packing
    if pack > 1:
        G_p = jnp.kron(jnp.eye(pack, dtype=jnp.float32), G)   # block-diag (Dp, Dp)
    else:
        G_p = G
    b_p = jnp.tile(b.astype(jnp.float32), (1, pack))     # (1, Dp), stays f32

    Rp, Dp = x_p.shape
    # Only G is cast in the wrapper (tiny, resident). x keeps its HBM dtype.
    G_p = G_p.astype(compute_dtype)

    x_isz = jnp.dtype(x.dtype).itemsize
    g_isz = jnp.dtype(compute_dtype).itemsize
    o_isz = jnp.dtype(out_dtype).itemsize
    vmem_cap = _vmem_capacity_bytes()

    # --- Batch tiling (generation-aware) + row padding so the tile divides. ---
    if tb is None:
        tb = _pick_tb(Rp, Dp, x_isz, o_isz, vmem_cap)
    assert tb == Rp or tb % 8 == 0, "batch tile must be a multiple of 8 or full"
    Rp_pad = Rp if tb == Rp else _round_up(Rp, tb)
    if Rp_pad != Rp:
        x_p = jnp.pad(x_p, ((0, Rp_pad - Rp), (0, 0)))

    # --- VMEM limit: raise only when the tiles need more than the conservative
    #     scoped default; never exceed 75% of the physical VMEM (v7x = 64 MiB). ---
    needed = 2 * tb * Dp * (x_isz + o_isz) + 2 * Dp * Dp * g_isz + 2 * Dp * 4
    vmem_limit = None
    if needed > 12 * 1024 * 1024:
        vmem_limit = int(min(max(int(1.5 * needed), 16 << 20),
                             int(0.75 * vmem_cap)))

    cost = pl.CostEstimate(
        flops=2 * Rp_pad * Dp * Dp,
        transcendentals=0,
        bytes_accessed=int(Rp_pad * Dp * x_isz + Dp * Dp * g_isz + Dp * 4
                           + Rp_pad * Dp * o_isz),
    )

    kernel = functools.partial(toy_model_kernel, compute_dtype=compute_dtype)

    out_p = pl.pallas_call(
        kernel,
        out_shape=jax.ShapeDtypeStruct((Rp_pad, Dp), out_dtype),
        grid_spec=pltpu.PrefetchScalarGridSpec(
            num_scalar_prefetch=0,
            grid=(Rp_pad // tb,),
            in_specs=[
                pl.BlockSpec((tb, Dp), lambda i: (i, 0)),   # x tile over packed batch
                pl.BlockSpec((Dp, Dp), lambda i: (0, 0)),   # G resident across grid
                pl.BlockSpec((1, Dp), lambda i: (0, 0)),    # b resident across grid
            ],
            out_specs=pl.BlockSpec((tb, Dp), lambda i: (i, 0)),
        ),
        compiler_params=pltpu.CompilerParams(
            dimension_semantics=("parallel",),
            vmem_limit_bytes=vmem_limit,
        ),
        cost_estimate=cost,
    )(x_p, G_p, b_p)

    # Unpack and drop padded rows.
    return out_p.reshape(Rp_pad * pack, D_in)[:B]


def reference(x, W, b):
    return jnp.maximum(x @ W @ W.T + b, 0.0)


if __name__ == "__main__":
    # Small shapes consistent with the module: batch=8, input_dim=32, hidden_dim=8.
    B, input_dim, hidden_dim = 8, 32, 8

    key = jax.random.PRNGKey(0)
    k_w, k_b, k_x = jax.random.split(key, 3)

    # Deterministic init matching the PyTorch __init__ bounds.
    W_bound = float(np.sqrt(6.0 / (input_dim + hidden_dim)))
    b_bound = float(np.sqrt(6.0 / (input_dim + 1)))
    W = jax.random.uniform(k_w, (input_dim, hidden_dim), jnp.float32,
                           minval=-W_bound, maxval=W_bound)
    b = jax.random.uniform(k_b, (1, input_dim), jnp.float32,
                           minval=-b_bound, maxval=b_bound)
    x = jax.random.normal(k_x, (B, input_dim), jnp.float32)

    ref = jax.block_until_ready(reference(x, W, b))

    # Default path: bf16-fed MXU (all generations), f32 accumulation -> loose tol.
    out_bf16 = jax.block_until_ready(anthropic_toy_model(x, W, b))
    np.testing.assert_allclose(np.asarray(out_bf16), np.asarray(ref),
                               rtol=1e-1, atol=1e-1)

    # f32 compute path: matches the reference tightly.
    out_f32 = jax.block_until_ready(
        anthropic_toy_model(x, W, b, compute_dtype=jnp.float32))
    np.testing.assert_allclose(np.asarray(out_f32), np.asarray(ref),
                               rtol=1e-5, atol=1e-5)

    # Exercise the batch-padding (B not a multiple of the pack factor) path.
    x_odd = jax.random.normal(jax.random.PRNGKey(1), (10, input_dim), jnp.float32)
    ref_odd = jax.block_until_ready(reference(x_odd, W, b))
    out_odd = jax.block_until_ready(
        anthropic_toy_model(x_odd, W, b, compute_dtype=jnp.float32))
    np.testing.assert_allclose(np.asarray(out_odd), np.asarray(ref_odd),
                               rtol=1e-5, atol=1e-5)

    print("KERNEL_OK")
</pallas_src>

<mosaic_0001>
module attributes {stable_mosaic.version = 11 : i64} {
  func.func @toy_model_kernel(%arg0: i32, %arg1: memref<2x128xf32, #tpu.memory_space<vmem>>, %arg2: memref<128x128xbf16, #tpu.memory_space<vmem>>, %arg3: memref<1x128xf32, #tpu.memory_space<vmem>>, %arg4: memref<2x128xf32, #tpu.memory_space<vmem>>) attributes {dimension_semantics = [#tpu.dimension_semantics<parallel>], iteration_bounds = array<i64: 1>, scalar_prefetch = 0 : i64, scratch_operands = 0 : i64, tpu.core_type = #tpu.core_type<tc>, window_params = [{transform_indices = @transform_0, window_bounds = array<i64: 2, 128>}, {pipeline_mode = #tpu.pipeline_mode<synchronous>, transform_indices = @transform_1, window_bounds = array<i64: 128, 128>}, {pipeline_mode = #tpu.pipeline_mode<synchronous>, transform_indices = @transform_2, window_bounds = array<i64: 1, 128>}, {transform_indices = @transform_3, window_bounds = array<i64: 2, 128>}]} {
    %c0 = arith.constant 0 : index
    %c0_0 = arith.constant 0 : index
    %0 = vector.load %arg1[%c0, %c0_0] : memref<2x128xf32, #tpu.memory_space<vmem>>, vector<2x128xf32>
    %1 = arith.truncf %0 : vector<2x128xf32> to vector<2x128xbf16>
    %c0_1 = arith.constant 0 : index
    %c0_2 = arith.constant 0 : index
    %2 = vector.load %arg2[%c0_1, %c0_2] : memref<128x128xbf16, #tpu.memory_space<vmem>>, vector<128x128xbf16>
    %cst = arith.constant dense<0.000000e+00> : vector<2x128xf32>
    %3 = tpu.matmul %1, %2, %cst {dimension_numbers = #tpu.dot_dimension_numbers<[1], [0], [0], [1], [0, 0, 1, 1], [], []>} : vector<2x128xbf16>, vector<128x128xbf16>, vector<2x128xf32> -> vector<2x128xf32>
    %c0_3 = arith.constant 0 : index
    %c0_4 = arith.constant 0 : index
    %4 = vector.load %arg3[%c0_3, %c0_4] : memref<1x128xf32, #tpu.memory_space<vmem>>, vector<1x128xf32>
    %5 = vector.broadcast %4 : vector<1x128xf32> to vector<2x128xf32>
    %6 = arith.addf %3, %5 : vector<2x128xf32>
    %cst_5 = arith.constant 0.000000e+00 : f32
    %7 = vector.broadcast %cst_5 : f32 to vector<2x128xf32>
    %8 = arith.maximumf %6, %7 : vector<2x128xf32>
    %c0_6 = arith.constant 0 : index
    %c0_7 = arith.constant 0 : index
    %9 = vector.load %arg4[%c0_6, %c0_7] : memref<2x128xf32, #tpu.memory_space<vmem>>, vector<2x128xf32>
    tpu.vector_store %arg4[%c0_6, %c0_7], %8 {strides = array<i32>} : memref<2x128xf32, #tpu.memory_space<vmem>>, vector<2x128xf32>,
    return
  }
  func.func @transform_0(%arg0: i32) -> (i32, i32) {
    %c0_i32 = arith.constant 0 : i32
    %c0_i32_0 = arith.constant 0 : i32
    return %arg0, %c0_i32 : i32, i32
  }
  func.func @transform_1(%arg0: i32) -> (i32, i32) {
    %c0_i32 = arith.constant 0 : i32
    %c0_i32_0 = arith.constant 0 : i32
    %c0_i32_1 = arith.constant 0 : i32
    return %c0_i32, %c0_i32_0 : i32, i32
  }
  func.func @transform_2(%arg0: i32) -> (i32, i32) {
    %c0_i32 = arith.constant 0 : i32
    %c0_i32_0 = arith.constant 0 : i32
    %c0_i32_1 = arith.constant 0 : i32
    return %c0_i32, %c0_i32_0 : i32, i32
  }
  func.func @transform_3(%arg0: i32) -> (i32, i32) {
    %c0_i32 = arith.constant 0 : i32
    %c0_i32_0 = arith.constant 0 : i32
    return %arg0, %c0_i32 : i32, i32
  }
}

</mosaic_0001>

<bundles_post_ra>
// kernel: tpu_custom_call.1
= control target key start
LH: loop header
LB: loop body
LE: loop exit
PB: predicated region body
PF: predicated region fallthrough
CT: control target
= control target key end

     0   :  { %8 = vsyncpa [#allocation3], 0  ;;  %s371_s0 = inlined_call_operand.hbm [shape: f32[2,128], index: 0, kind: input, shape index: {}]   ;;  %s372_s1 = inlined_call_operand.hbm [shape: bf16[128,128], index: 1, kind: input, shape index: {}]   ;;  %s373_s2 = inlined_call_operand.vmem [shape: f32[1,128], index: 2, kind: input, shape index: {}]   ;;  %s374_s3 = inlined_call_operand.hbm [shape: f32[2,128], index: 3, kind: output, shape index: {}]  }
   0x1   :  { %9 = vsyncpa [#allocation6], 0 }
   0x2   :  { %10 = vsyncpa [#allocation4], 0  ;;  %s298_s12 = smov [#allocation2]   ;;  %s299_s14 = smov [#allocation5]  }
   0x3   :  { %s17_s13 = sshll.u32 %s298_s12, 4  ;;  %s26_s15 = sshll.u32 %s299_s14, 4  ;;  %s18_s13 = int_to_ptr.vmem [resolvable:$true] %s17_s13  ;;  %s325_s15 = int_to_ptr.vmem [resolvable:$true] %s26_s15 }
   0x4   :  { %s226_s18 = scalar_lea.hbm %s371_s0, 32 }
   0x5   :  { %p227_p0 = scmp.ne.s32.totalorder %s371_s0, %s226_s18  ;;  %p230_p1 = scmp.lt.u32.totalorder %s226_s18, %s371_s0 }
   0x7   :  { %p232_p2 = pnand %p230_p1, %p227_p0 }
   0x9   :  { %235 = shalt.err (!%p232_p2)
}
   0xa   :  { %s236_s23 = scalar_lea.vmem %s18_s13, 32  ;;  %p241_p4 = scmp.lt.s32.totalorder %s18_s13, %s18_s13 }
   0xb   :  { %p237_p3 = scmp.ne.s32.totalorder %s18_s13, %s236_s23  ;;  %p242_p5 = scmp.lt.s32.totalorder %s236_s23, %s236_s23 }
   0xd   :  { %p243_p6 = por %p242_p5, %p241_p4 }
   0xf   :  { %p244_p7 = pnand %p243_p6, %p237_p3 }
  0x11   :  { %247 = shalt.err (!%p244_p7)
}
  0x12   :  { %20 = dma.hbm_to_vmem [thread:$0]  %s371_s0, 32, %s18_s13, [#allocation3]  }
  0x13   :  { %s248_s28 = scalar_lea.hbm %s372_s1, 1024 }
  0x14   :  { %p249_p8 = scmp.ne.s32.totalorder %s372_s1, %s248_s28  ;;  %p252_p9 = scmp.lt.u32.totalorder %s248_s28, %s372_s1 }
  0x16   :  { %p254_p10 = pnand %p252_p9, %p249_p8 }
  0x18   :  { %257 = shalt.err (!%p254_p10)
}
  0x19   :  { %s258_s6 = scalar_lea.vmem %s325_s15, 1024  ;;  %p263_p12 = scmp.lt.s32.totalorder %s325_s15, %s325_s15 }
  0x1a   :  { %p259_p11 = scmp.ne.s32.totalorder %s325_s15, %s258_s6  ;;  %p264_p13 = scmp.lt.s32.totalorder %s258_s6, %s258_s6 }
  0x1c   :  { %p265_p0 = por %p264_p13, %p263_p12 }
  0x1e   :  { %p266_p1 = pnand %p265_p0, %p259_p11 }
  0x20   :  { %269 = shalt.err (!%p266_p1)
}
  0x21   :  { %s300_s0 = smov 64   ;;  %s301_s7 = smov 4  }
  0x22   :  { %32 = dma.hbm_to_vmem [thread:$0]  %s372_s1, 1024, %s325_s15, [#allocation6], %s300_s0, %s300_s0, %s301_s7  }
  0x23   :  { %292 = dma.done.wait [#allocation3], 32  }
  0x24   :  { %293 = vsyncadd [#allocation3], 4294967264 }
  0x25   :  { %294 = dma.done.wait [#allocation6], 1024  }
  0x26   :  { %295 = vsyncadd [#allocation6], 4294966272  ;;  %v302_v0 = vmov 0.0   ;;  %vm303_vm0 = vmmov 0   ;;  %v218_v1 = vld [vmem:[#allocation5] sm:$0xff]   ;;  %v219_v2 = vld [vmem:[#allocation5 + $0x8] sm:$0xff]  }
  0x27   :  { %191 = vmatprep.subr.bf16.mxu0 %v302_v0  ;;  %207 = vmatprep.mubr.msk.bf16.mxu0 %vm303_vm0, %v302_v0  ;;  %v220_v3 = vld [vmem:[#allocation5 + $0x10] sm:$0xff]   ;;  %v221_v4 = vld [vmem:[#allocation5 + $0x18] sm:$0xff]   ;;  %v222_v5 = vld [vmem:[#allocation5 + $0x20] sm:$0xff]   ;;  %s304_s11 = smov [#allocation7]  }
  0x28   :  { %192 = vmatpush3.bf16.msra.mxu0 %v218_v1  ;;  %v223_v6 = vld [vmem:[#allocation5 + $0x28] sm:$0xff]   ;;  %v224_v7 = vld [vmem:[#allocation5 + $0x30] sm:$0xff]   ;;  %v225_v8 = vld [vmem:[#allocation5 + $0x38] sm:$0xff]   ;;  %s163_s12 = sshll.u32 %s304_s11, 4  ;;  %s164_s12 = int_to_ptr.vmem [resolvable:$true] %s163_s12 }
  0x29   :  { %193 = vmatprep.subr.bf16.mxu0 %v302_v0  ;;  %v42_v9 = vld [vmem:[#allocation2] sm:$0x3]  ;;  %s270_s13 = scalar_lea.vmem %s164_s12, 32  ;;  %p275_p3 = scmp.lt.s32.totalorder %s164_s12, %s164_s12 }
  0x2a   :  { %v43_v10 = vpack.c.bf16 %v42_v9, %v42_v9  ;;  %v173_v11 = vld [vmem:[%s373_s2] ss:$0 sm:$0xff]  ;;  %p271_p2 = scmp.ne.s32.totalorder %s164_s12, %s270_s13  ;;  %p276_p4 = scmp.lt.s32.totalorder %s270_s13, %s270_s13 }
  0x2c   :  { %194 = vmatpush3.bf16.msra.mxu0 %v219_v2  ;;  %p277_p5 = por %p276_p4, %p275_p3 }
  0x2d   :  { %195 = vmatprep.subr.bf16.mxu0 %v302_v0 }
  0x2e   :  { %p278_p6 = pnand %p277_p5, %p271_p2 }
  0x30   :  { %196 = vmatpush3.bf16.msra.mxu0 %v220_v3 }
  0x31   :  { %197 = vmatprep.subr.bf16.mxu0 %v302_v0 }
  0x34   :  { %198 = vmatpush3.bf16.msra.mxu0 %v221_v4 }
  0x35   :  { %199 = vmatprep.subr.bf16.mxu0 %v302_v0 }
  0x38   :  { %200 = vmatpush3.bf16.msra.mxu0 %v222_v5 }
  0x39   :  { %201 = vmatprep.subr.bf16.mxu0 %v302_v0 }
  0x3c   :  { %202 = vmatpush3.bf16.msra.mxu0 %v223_v6 }
  0x3d   :  { %203 = vmatprep.subr.bf16.mxu0 %v302_v0 }
  0x40   :  { %204 = vmatpush3.bf16.msra.mxu0 %v224_v7 }
  0x41   :  { %205 = vmatprep.subr.bf16.mxu0 %v302_v0 }
  0x44   :  { %206 = vmatpush3.bf16.msra.mxu0 %v225_v8 }
  0x47   :  { %208 = vmatmul.mubr.bf16.vlgmr.msra.gmra.mrb[0].mxu0 %v43_v10 }
 0x11a   :  { %v149_v12 = vpop.f32.mrb[0].mxu0 }
 0x11b   :  { %v150_v13 = vadd.f32 %v173_v11, %v149_v12  ;;  %v209_v14 = vpop.f32.mrb[1].mxu0 }
 0x11c   :  { %v152_v15 = vpop.f32.mrb[2].mxu0 }
 0x11d   :  { %v155_v16 = vmax.f32 %v150_v13, 0.0  ;;  %v210_v17 = vpop.f32.mrb[3].mxu0 }
 0x11f   :  { %156 = vst [vmem:[#allocation7] sm:$0x3] %v155_v16 }
 0x120   :  { %281 = shalt.err (!%p278_p6)
}
 0x121   :  { %s282_s2 = scalar_lea.hbm %s374_s3, 32 }
 0x122   :  { %p283_p7 = scmp.ne.s32.totalorder %s374_s3, %s282_s2  ;;  %p286_p8 = scmp.lt.u32.totalorder %s282_s2, %s374_s3 }
 0x124   :  { %p288_p9 = pnand %p286_p8, %p283_p7 }
 0x126   :  { %291 = shalt.err (!%p288_p9)
}
 0x127   :  { %166 = dma.vmem_to_hbm [thread:$0]  %s164_s12, 32, %s374_s3, [#allocation4]  }
 0x128   :  { %296 = dma.done.wait [#allocation4], 32  }
 0x129   :  { %297 = vsyncadd [#allocation4], 4294967264 }
 0x12a   :  { %170 = vsyncpa [#allocation3], 1 }
 0x12b   :  { %171 = vsyncpa [#allocation6], 1 }
 0x12c   :  { %172 = vsyncpa [#allocation4], 1 }

</bundles_post_ra>
